<compile_context>
chip_gen: v5e
topology: v5e:2x2
jax: 0.10.0
libtpu: 0.0.40
codegen_flags: <defaults>
</compile_context>

<pallas_src>
import jax
import jax.numpy as jnp
from jax import lax
from jax.experimental import pallas as pl
from jax.experimental.pallas import tpu as pltpu

_BN_EPS = 1e-5


def _round_up(x, m):
    return ((x + m - 1) // m) * m


# Derive VMEM limit from the chip (v5e/v6e: 128 MiB -> ~96 MiB; v7x: 64 MiB -> 48 MiB).
try:
    _VMEM_CAP = int(pltpu.get_tpu_info().vmem_capacity_bytes)
except Exception:
    _VMEM_CAP = 64 * 1024 * 1024          # conservative (v7x per-TC) fallback
_VMEM_LIMIT = max(32 * 1024 * 1024, (_VMEM_CAP * 3) // 4)
_TILE_BUDGET = int(_VMEM_LIMIT * 0.7)     # per-grid-step working set (padded bytes)


def scale_dimension(dim, scale):
    # mirrors ConvBNReLU.scale_dimension
    return int((float(dim) - 1.0) * scale + 1.0) if dim % 2 == 1 else int(float(dim) * scale)


def bilinear_resize_align_corners(x_nhwc, out_h, out_w):
    # F.interpolate(mode='bilinear', align_corners=True), separable, plain-JAX glue.
    # TODO(synk): fold into kernel 1 via PrefetchScalarGridSpec'd index/weight tables
    # to save one input-sized HBM round trip.
    n, h, w, c = x_nhwc.shape

    def src_coords(out_dim, in_dim):
        if out_dim == 1:
            return jnp.zeros((1,), jnp.float32)
        return jnp.arange(out_dim, dtype=jnp.float32) * ((in_dim - 1) / (out_dim - 1))

    hy = src_coords(out_h, h)
    wx = src_coords(out_w, w)
    y0 = jnp.floor(hy).astype(jnp.int32)
    y1 = jnp.minimum(y0 + 1, h - 1)
    ty = (hy - y0.astype(jnp.float32))[None, :, None, None]
    x0 = jnp.floor(wx).astype(jnp.int32)
    x1 = jnp.minimum(x0 + 1, w - 1)
    tx = (wx - x0.astype(jnp.float32))[None, None, :, None]

    top = jnp.take(x_nhwc, y0, axis=1)
    bot = jnp.take(x_nhwc, y1, axis=1)
    xh = top * (1.0 - ty) + bot * ty
    left = jnp.take(xh, x0, axis=2)
    right = jnp.take(xh, x1, axis=2)
    return left * (1.0 - tx) + right * tx


def conv_stats_kernel(col_ref, w_ref, stats_ref):
    # col_ref:   (TM, K_pad)    im2col rows for this tile (zero rows beyond valid H)
    # w_ref:     (K_pad, C_pad) zero-padded im2col-folded conv weight
    # stats_ref: (2, C_pad)     per-tile per-channel [sum, sum of squares]
    acc = jnp.dot(col_ref[...], w_ref[...], preferred_element_type=jnp.float32)
    stats_ref[0:1, :] = jnp.sum(acc, axis=0, keepdims=True)
    stats_ref[1:2, :] = jnp.sum(acc * acc, axis=0, keepdims=True)
    # TODO(synk): E[x^2]-mean^2 in f32 is cancellation-prone when |mean| >> std;
    # switch to a shifted (per-tile mean) accumulation if activations can be large.


def conv_bn_relu_kernel(col_ref, wt_ref, scale_ref, bias_ref, o_ref):
    # col_ref:   (TM, K_pad)
    # wt_ref:    (C_pad, K_pad)  transposed zero-padded weight (A @ B^T MXU form)
    # scale_ref: (C_pad, 1), bias_ref: (C_pad, 1)  folded BN scale / bias
    # o_ref:     (C_out, TM)     channel-major tile -> output is already NCHW-flat
    c_out = o_ref.shape[0]
    acc = lax.dot_general(wt_ref[...], col_ref[...],
                          (((1,), (1,)), ((), ())),
                          preferred_element_type=jnp.float32)        # (C_pad, TM)
    y = jnp.maximum(acc * scale_ref[...] + bias_ref[...], 0.0)
    o_ref[...] = y[:c_out, :]


def _block_bytes(rows, cols, itemsize=4):
    # Real VMEM footprint of a block once (8,128)-tile padding is applied.
    return _round_up(max(rows, 1), 8) * _round_up(max(cols, 1), 128) * itemsize


def _step_vmem_bytes(tm, k_pad, c_pad, c_out):
    col = _block_bytes(tm, k_pad)
    wgt = _block_bytes(k_pad, c_pad)          # same size for w and w^T
    out = _block_bytes(c_out, tm)
    stats = _block_bytes(2, c_pad)
    vecs = 2 * _block_bytes(c_pad, 1)
    acc = _block_bytes(c_pad, tm)             # matmul result / temps
    # 2x: Pallas double-buffers every pipelined block.
    return 2 * (col + wgt + out + stats + vecs) + 2 * acc


def _choose_h_tile(h2, w2, k_pad, c_pad, c_out, budget=_TILE_BUDGET):
    # Legal tiles: full height (block == full array dim) or any TH whose row count
    # TH*W2 is a multiple of 128 (keeps all blocks (8,128)-legal when n_h > 1).
    # TODO(synk): masked tail handling would let arbitrary TH be used for prime H.
    cands = sorted({h2} | {t for t in range(1, h2) if (t * w2) % 128 == 0})
    fitting = [t for t in cands
               if _step_vmem_bytes(t * w2, k_pad, c_pad, c_out) <= budget]
    return max(fitting) if fitting else min(cands)


@jax.jit
def conv_bn_relu_forward(x_nchw, w_oihw, gamma, beta):
    n, c_in, h, w = x_nchw.shape
    c_out = w_oihw.shape[0]
    scale = c_in / c_out

    # NCHW -> NHWC (channels-last) for resize / patch extraction.
    x = jnp.transpose(x_nchw, (0, 2, 3, 1)).astype(jnp.float32)

    # Module semantics: resize whenever scale != 0; skip when numerically identity.
    if scale != 0:
        h2 = scale_dimension(h, scale)
        w2 = scale_dimension(w, scale)
        if (h2, w2) != (h, w):
            x = bilinear_resize_align_corners(x, h2, w2)
    else:
        h2, w2 = h, w

    k_raw = 9 * c_in
    k_pad = _round_up(k_raw, 128)
    c_pad = _round_up(c_out, 128)

    th = _choose_h_tile(h2, w2, k_pad, c_pad, c_out)
    n_h = pl.cdiv(h2, th)
    h2_pad = n_h * th
    tm = th * w2

    # Wrapper-side im2col (review: kills the lane-sparse in-kernel patch-store loop).
    # Zero rows for h >= H2 contribute 0 to the BN sums; zero K columns match zero
    # weight rows, so padding is numerically inert.
    x_padded = jnp.pad(x, ((0, 0), (1, 1), (1, 1), (0, 0)))
    taps = [x_padded[:, ky:ky + h2, kx:kx + w2, :] for ky in range(3) for kx in range(3)]
    col = jnp.concatenate(taps, axis=-1)                              # (N, H2, W2, 9*C_in)
    col = jnp.pad(col, ((0, 0), (0, h2_pad - h2), (0, 0), (0, k_pad - k_raw)))
    col = col.reshape(n, h2_pad * w2, k_pad)

    # OIHW -> (9*C_in, C_out), zero-padded to (K_pad, C_pad); plus its transpose.
    w2d = jnp.transpose(w_oihw, (2, 3, 1, 0)).astype(jnp.float32).reshape(k_raw, c_out)
    w2d = jnp.pad(w2d, ((0, k_pad - k_raw), (0, c_pad - c_out)))
    w2d_t = w2d.T
    # TODO(synk): on v6e/v7x cast col/w2d to bf16 (keep f32 accumulation and BN math)
    # for 2x MXU throughput and half the HBM/VMEM traffic.

    grid = (n, n_h)
    cparams = pltpu.CompilerParams(
        dimension_semantics=("parallel", "parallel"),
        vmem_limit_bytes=_VMEM_LIMIT)

    # Pass 1: conv (never materialized in HBM) -> per-tile per-channel sum / sumsq.
    # TODO(synk): once DMA-bound, bump the col input to pipeline_mode=pl.Buffered(3).
    stats = pl.pallas_call(
        conv_stats_kernel,
        out_shape=jax.ShapeDtypeStruct((n, n_h, 2, c_pad), jnp.float32),
        grid=grid,
        in_specs=[
            pl.BlockSpec((None, tm, k_pad), lambda b, i: (b, i, 0)),
            pl.BlockSpec((k_pad, c_pad), lambda b, i: (0, 0)),
        ],
        out_specs=pl.BlockSpec((None, None, 2, c_pad), lambda b, i: (b, i, 0, 0)),
        compiler_params=cparams,
    )(col, w2d)

    # BatchNorm fold (tiny C-sized vectors, plain JAX): biased batch variance,
    # gamma/beta folded into per-channel scale & bias.
    m_total = jnp.float32(n * h2 * w2)
    s = jnp.sum(stats[:, :, 0, :], axis=(0, 1))
    ss = jnp.sum(stats[:, :, 1, :], axis=(0, 1))
    mean = s / m_total
    var = jnp.maximum(ss / m_total - mean * mean, 0.0)
    gamma_p = jnp.pad(gamma.astype(jnp.float32), (0, c_pad - c_out))
    beta_p = jnp.pad(beta.astype(jnp.float32), (0, c_pad - c_out))
    scale_vec = gamma_p * lax.rsqrt(var + _BN_EPS)
    bias_vec = beta_p - mean * scale_vec
    scale_col = scale_vec.reshape(c_pad, 1)
    bias_col = bias_vec.reshape(c_pad, 1)

    # Pass 2: recompute the conv tile, apply BN + ReLU, write channel-major so the
    # result is already NCHW (no XLA transpose pass over the output).
    out3 = pl.pallas_call(
        conv_bn_relu_kernel,
        out_shape=jax.ShapeDtypeStruct((n, c_out, h2_pad * w2), jnp.float32),
        grid=grid,
        in_specs=[
            pl.BlockSpec((None, tm, k_pad), lambda b, i: (b, i, 0)),
            pl.BlockSpec((c_pad, k_pad), lambda b, i: (0, 0)),
            pl.BlockSpec((c_pad, 1), lambda b, i: (0, 0)),
            pl.BlockSpec((c_pad, 1), lambda b, i: (0, 0)),
        ],
        out_specs=pl.BlockSpec((None, c_out, tm), lambda b, i: (b, 0, i)),
        compiler_params=cparams,
    )(col, w2d_t, scale_col, bias_col)

    out = out3[:, :, :h2 * w2]
    return out.reshape(n, c_out, h2, w2)


def _reference_forward(x_nchw, w_oihw, gamma, beta):
    # Pure-JAX reference of the same forward pass (sanity check only).
    n, c_in, h, w = x_nchw.shape
    c_out = w_oihw.shape[0]
    scale = c_in / c_out
    x = jnp.transpose(x_nchw, (0, 2, 3, 1)).astype(jnp.float32)
    if scale != 0:
        h2 = scale_dimension(h, scale)
        w2 = scale_dimension(w, scale)
        if (h2, w2) != (h, w):
            x = bilinear_resize_align_corners(x, h2, w2)
    y = jax.lax.conv_general_dilated(
        x, jnp.transpose(w_oihw, (2, 3, 1, 0)).astype(jnp.float32),
        window_strides=(1, 1), padding="SAME",
        dimension_numbers=("NHWC", "HWIO", "NHWC"))
    mean = jnp.mean(y, axis=(0, 1, 2))
    var = jnp.mean((y - mean) ** 2, axis=(0, 1, 2))
    y = (y - mean) * jax.lax.rsqrt(var + _BN_EPS) * gamma + beta
    y = jnp.maximum(y, 0.0)
    return jnp.transpose(y, (0, 3, 1, 2))


if __name__ == "__main__":
    key = jax.random.PRNGKey(0)
    k_x, k_w = jax.random.split(key)

    # Small shapes consistent with the module: N=2, C_in=4, C_out=8, H=W=16.
    N, C_in, C_out, H, W = 2, 4, 8, 16, 16

    x = jax.random.normal(k_x, (N, C_in, H, W), dtype=jnp.float32)

    # Conv weight: kaiming_normal_-style (fan_in, gain=sqrt(2)), shape (C_out, C_in, 3, 3)
    fan_in = C_in * 3 * 3
    std = (2.0 / fan_in) ** 0.5
    w = jax.random.normal(k_w, (C_out, C_in, 3, 3), dtype=jnp.float32) * std

    # BatchNorm params after _initialize_weights(): gamma=1, beta=0
    gamma = jnp.ones((C_out,), dtype=jnp.float32)
    beta = jnp.zeros((C_out,), dtype=jnp.float32)

    out = conv_bn_relu_forward(x, w, gamma, beta)
    out = jax.block_until_ready(out)

    # sanity: scale = 4/8 = 0.5 -> output spatial = 8x8, channels = C_out
    assert out.shape == (N, C_out, 8, 8), out.shape
    assert bool(jnp.all(out >= 0.0)), "ReLU output must be non-negative"

    ref = _reference_forward(x, w, gamma, beta)
    max_err = float(jnp.max(jnp.abs(out - ref)))
    assert jnp.allclose(out, ref, atol=1e-3, rtol=1e-3), max_err

    print("KERNEL_OK")
</pallas_src>

<mosaic_0001>
module attributes {stable_mosaic.version = 11 : i64} {
  func.func @conv_stats_kernel(%arg0: i32, %arg1: i32, %arg2: memref<1x64x128xf32, #tpu.memory_space<vmem>>, %arg3: memref<128x128xf32, #tpu.memory_space<vmem>>, %arg4: memref<1x1x2x128xf32, #tpu.memory_space<vmem>>) attributes {dimension_semantics = [#tpu.dimension_semantics<parallel>, #tpu.dimension_semantics<parallel>], iteration_bounds = array<i64: 2, 1>, scalar_prefetch = 0 : i64, scratch_operands = 0 : i64, tpu.core_type = #tpu.core_type<tc>, window_params = [{transform_indices = @transform_0, window_bounds = array<i64: 1, 64, 128>}, {pipeline_mode = #tpu.pipeline_mode<synchronous>, transform_indices = @transform_1, window_bounds = array<i64: 128, 128>}, {transform_indices = @transform_2, window_bounds = array<i64: 1, 1, 2, 128>}]} {
    %c0 = arith.constant 0 : index
    %c0_0 = arith.constant 0 : index
    %c0_1 = arith.constant 0 : index
    %0 = vector.load %arg2[%c0, %c0_0, %c0_1] : memref<1x64x128xf32, #tpu.memory_space<vmem>>, vector<1x64x128xf32>
    %1 = vector.shape_cast %0 : vector<1x64x128xf32> to vector<64x128xf32>
    %c0_2 = arith.constant 0 : index
    %c0_3 = arith.constant 0 : index
    %2 = vector.load %arg3[%c0_2, %c0_3] : memref<128x128xf32, #tpu.memory_space<vmem>>, vector<128x128xf32>
    %cst = arith.constant dense<0.000000e+00> : vector<64x128xf32>
    %3 = tpu.matmul %1, %2, %cst {dimension_numbers = #tpu.dot_dimension_numbers<[1], [0], [0], [1], [0, 0, 1, 1], [], []>} : vector<64x128xf32>, vector<128x128xf32>, vector<64x128xf32> -> vector<64x128xf32>
    %cst_4 = arith.constant dense<0.000000e+00> : vector<128xf32>
    %4 = vector.multi_reduction <add>, %3, %cst_4 [0] : vector<64x128xf32> to vector<128xf32>
    %5 = vector.shape_cast %4 : vector<128xf32> to vector<1x128xf32>
    %c0_5 = arith.constant 0 : index
    %c0_6 = arith.constant 0 : index
    %c0_7 = arith.constant 0 : index
    %c0_8 = arith.constant 0 : index
    %6 = vector.load %arg4[%c0_5, %c0_6, %c0_7, %c0_8] : memref<1x1x2x128xf32, #tpu.memory_space<vmem>>, vector<1x1x1x128xf32>
    %7 = vector.shape_cast %6 : vector<1x1x1x128xf32> to vector<1x128xf32>
    %8 = vector.shape_cast %5 : vector<1x128xf32> to vector<1x1x1x128xf32>
    tpu.vector_store %arg4[%c0_5, %c0_6, %c0_7, %c0_8], %8 {strides = array<i32>} : memref<1x1x2x128xf32, #tpu.memory_space<vmem>>, vector<1x1x1x128xf32>,
    %9 = arith.mulf %3, %3 : vector<64x128xf32>
    %cst_9 = arith.constant dense<0.000000e+00> : vector<128xf32>
    %10 = vector.multi_reduction <add>, %9, %cst_9 [0] : vector<64x128xf32> to vector<128xf32>
    %11 = vector.shape_cast %10 : vector<128xf32> to vector<1x128xf32>
    %c0_10 = arith.constant 0 : index
    %c0_11 = arith.constant 0 : index
    %c1 = arith.constant 1 : index
    %c0_12 = arith.constant 0 : index
    %12 = vector.load %arg4[%c0_10, %c0_11, %c1, %c0_12] : memref<1x1x2x128xf32, #tpu.memory_space<vmem>>, vector<1x1x1x128xf32>
    %13 = vector.shape_cast %12 : vector<1x1x1x128xf32> to vector<1x128xf32>
    %14 = vector.shape_cast %11 : vector<1x128xf32> to vector<1x1x1x128xf32>
    tpu.vector_store %arg4[%c0_10, %c0_11, %c1, %c0_12], %14 {strides = array<i32>} : memref<1x1x2x128xf32, #tpu.memory_space<vmem>>, vector<1x1x1x128xf32>,
    return
  }
  func.func @transform_0(%arg0: i32, %arg1: i32) -> (i32, i32, i32) {
    %c0_i32 = arith.constant 0 : i32
    %c0_i32_0 = arith.constant 0 : i32
    return %arg0, %arg1, %c0_i32 : i32, i32, i32
  }
  func.func @transform_1(%arg0: i32, %arg1: i32) -> (i32, i32) {
    %c0_i32 = arith.constant 0 : i32
    %c0_i32_0 = arith.constant 0 : i32
    %c0_i32_1 = arith.constant 0 : i32
    return %c0_i32, %c0_i32_0 : i32, i32
  }
  func.func @transform_2(%arg0: i32, %arg1: i32) -> (i32, i32, i32, i32) {
    %c0_i32 = arith.constant 0 : i32
    %c0_i32_0 = arith.constant 0 : i32
    %c0_i32_1 = arith.constant 0 : i32
    return %arg0, %arg1, %c0_i32, %c0_i32_0 : i32, i32, i32, i32
  }
}

module attributes {stable_mosaic.version = 11 : i64} {
  func.func @conv_bn_relu_kernel(%arg0: i32, %arg1: i32, %arg2: memref<1x64x128xf32, #tpu.memory_space<vmem>>, %arg3: memref<128x128xf32, #tpu.memory_space<vmem>>, %arg4: memref<128x1xf32, #tpu.memory_space<vmem>>, %arg5: memref<128x1xf32, #tpu.memory_space<vmem>>, %arg6: memref<1x8x64xf32, #tpu.memory_space<vmem>>) attributes {dimension_semantics = [#tpu.dimension_semantics<parallel>, #tpu.dimension_semantics<parallel>], iteration_bounds = array<i64: 2, 1>, scalar_prefetch = 0 : i64, scratch_operands = 0 : i64, tpu.core_type = #tpu.core_type<tc>, window_params = [{transform_indices = @transform_0, window_bounds = array<i64: 1, 64, 128>}, {pipeline_mode = #tpu.pipeline_mode<synchronous>, transform_indices = @transform_1, window_bounds = array<i64: 128, 128>}, {pipeline_mode = #tpu.pipeline_mode<synchronous>, transform_indices = @transform_2, window_bounds = array<i64: 128, 1>}, {pipeline_mode = #tpu.pipeline_mode<synchronous>, transform_indices = @transform_3, window_bounds = array<i64: 128, 1>}, {transform_indices = @transform_4, window_bounds = array<i64: 1, 8, 64>}]} {
    %c0 = arith.constant 0 : index
    %c0_0 = arith.constant 0 : index
    %0 = vector.load %arg3[%c0, %c0_0] : memref<128x128xf32, #tpu.memory_space<vmem>>, vector<128x128xf32>
    %c0_1 = arith.constant 0 : index
    %c0_2 = arith.constant 0 : index
    %c0_3 = arith.constant 0 : index
    %1 = vector.load %arg2[%c0_1, %c0_2, %c0_3] : memref<1x64x128xf32, #tpu.memory_space<vmem>>, vector<1x64x128xf32>
    %2 = vector.shape_cast %1 : vector<1x64x128xf32> to vector<64x128xf32>
    %cst = arith.constant dense<0.000000e+00> : vector<128x64xf32>
    %3 = tpu.matmul %0, %2, %cst {dimension_numbers = #tpu.dot_dimension_numbers<[1], [1], [0], [0], [0, 0, 1, 0], [], []>} : vector<128x128xf32>, vector<64x128xf32>, vector<128x64xf32> -> vector<128x64xf32>
    %c0_4 = arith.constant 0 : index
    %c0_5 = arith.constant 0 : index
    %4 = vector.load %arg4[%c0_4, %c0_5] : memref<128x1xf32, #tpu.memory_space<vmem>>, vector<128x1xf32>
    %5 = vector.broadcast %4 : vector<128x1xf32> to vector<128x64xf32>
    %6 = arith.mulf %3, %5 : vector<128x64xf32>
    %c0_6 = arith.constant 0 : index
    %c0_7 = arith.constant 0 : index
    %7 = vector.load %arg5[%c0_6, %c0_7] : memref<128x1xf32, #tpu.memory_space<vmem>>, vector<128x1xf32>
    %8 = vector.broadcast %7 : vector<128x1xf32> to vector<128x64xf32>
    %9 = arith.addf %6, %8 : vector<128x64xf32>
    %cst_8 = arith.constant 0.000000e+00 : f32
    %10 = vector.broadcast %cst_8 : f32 to vector<128x64xf32>
    %11 = arith.maximumf %9, %10 : vector<128x64xf32>
    %12 = vector.extract_strided_slice %11 {offsets = [0, 0], sizes = [8, 64], strides = [1, 1]} : vector<128x64xf32> to vector<8x64xf32>
    %c0_9 = arith.constant 0 : index
    %c0_10 = arith.constant 0 : index
    %c0_11 = arith.constant 0 : index
    %13 = vector.load %arg6[%c0_9, %c0_10, %c0_11] : memref<1x8x64xf32, #tpu.memory_space<vmem>>, vector<1x8x64xf32>
    %14 = vector.shape_cast %13 : vector<1x8x64xf32> to vector<8x64xf32>
    %15 = vector.shape_cast %12 : vector<8x64xf32> to vector<1x8x64xf32>
    tpu.vector_store %arg6[%c0_9, %c0_10, %c0_11], %15 {strides = array<i32>} : memref<1x8x64xf32, #tpu.memory_space<vmem>>, vector<1x8x64xf32>,
    return
  }
  func.func @transform_0(%arg0: i32, %arg1: i32) -> (i32, i32, i32) {
    %c0_i32 = arith.constant 0 : i32
    %c0_i32_0 = arith.constant 0 : i32
    return %arg0, %arg1, %c0_i32 : i32, i32, i32
  }
  func.func @transform_1(%arg0: i32, %arg1: i32) -> (i32, i32) {
    %c0_i32 = arith.constant 0 : i32
    %c0_i32_0 = arith.constant 0 : i32
    %c0_i32_1 = arith.constant 0 : i32
    return %c0_i32, %c0_i32_0 : i32, i32
  }
  func.func @transform_2(%arg0: i32, %arg1: i32) -> (i32, i32) {
    %c0_i32 = arith.constant 0 : i32
    %c0_i32_0 = arith.constant 0 : i32
    %c0_i32_1 = arith.constant 0 : i32
    return %c0_i32, %c0_i32_0 : i32, i32
  }
  func.func @transform_3(%arg0: i32, %arg1: i32) -> (i32, i32) {
    %c0_i32 = arith.constant 0 : i32
    %c0_i32_0 = arith.constant 0 : i32
    %c0_i32_1 = arith.constant 0 : i32
    return %c0_i32, %c0_i32_0 : i32, i32
  }
  func.func @transform_4(%arg0: i32, %arg1: i32) -> (i32, i32, i32) {
    %c0_i32 = arith.constant 0 : i32
    %c0_i32_0 = arith.constant 0 : i32
    return %arg0, %c0_i32, %arg1 : i32, i32, i32
  }
}

</mosaic_0001>

<bundles_post_ra>
// kernel: conv_bn_relu_forward.3
= control target key start
LH: loop header
LB: loop body
LE: loop exit
PB: predicated region body
PF: predicated region fallthrough
CT: control target
= control target key end

     0   :  { %s511_s15 = smov 0   ;;  %s513_s16 = smov 0   ;;  %s612_s0 = inlined_call_operand.vmem [shape: f32[2,64,128], index: 0, kind: input, shape index: {}]   ;;  %s613_s1 = inlined_call_operand.vmem [shape: f32[128,128], index: 1, kind: input, shape index: {}]   ;;  %s614_s2 = inlined_call_operand.vmem [shape: f32[128,1], index: 2, kind: input, shape index: {}]   ;;  %s615_s3 = inlined_call_operand.vmem [shape: f32[128,1], index: 3, kind: input, shape index: {}]   ;;  %s616_s4 = inlined_call_operand.vmem [shape: f32[2,8,64], index: 4, kind: output, shape index: {}]  }
   0x1   :  { %s515_s17 = smov 0  }
   0x2 LB: > { %s26_s18 = sadd.s32 1, %s479_s16  ;;  %p404_p0 = scmp.ge.s32.totalorder %s483_s17, 1  ;;  %s483_s17 = sphi %s515_s17, %s14_s17   ;;  %s479_s16 = sphi %s513_s16, %s618_s16   ;;  %s475_s15 = sphi %s511_s15, %s617_s15  }
   0x3   : > { %p28_p1 = scmp.ge.s32.totalorder %s26_s18, 2  ;;  %p183_p2 = scmp.lt.s32.totalorder %s483_s17, 3 }
   0x5   : > { %s620_s18 = smov (%p28_p1, %s26_s18), 0  ;;  %p184_p3 = pnand %p404_p0, %p183_p2 }
   0x6   : > { %p216_p4 = scmp.lt.s32.totalorder (!%p184_p3), %s475_s15, 1 }
   0x7   : > { %187 = sbr.rel (%p184_p3) target bundleno = 203 (0xcb), region = 36 }
   0xc   : > { %s622_s15 = smov (!%p216_p4, %s475_s15), 1  ;;  %v306_v3 = vld [vmem:[%s614_s2] sm:$0xff]  ;;  %v485_v5 = vmov 0   ;;  %v241_v15 = vld [vmem:[%s613_s1 + $0x48] sm:$0xff]  ;;  %v242_v19 = vld [vmem:[%s613_s1 + $0x50] sm:$0xff]  ;;  %vm321_vm0 = vcmask 523264  }
   0xd   : > { %s410_s19 = sshll.u32 %s622_s15, 6  ;;  %460 = vset.pattern.permute.xlu0 %v485_v5  ;;  %v313_v7 = vld [vmem:[%s615_s3] sm:$0xff]  ;;  %v245_v16 = vld [vmem:[%s613_s1 + $0x68] sm:$0xff]  ;;  %v246_v20 = vld [vmem:[%s613_s1 + $0x70] sm:$0xff]  ;;  %s407_s11 = sshll.u32 %s622_s15, 3 }
   0xe   : > { %s535_s22 = scalar_lea.vmem %s612_s0, %s410_s19  ;;  %309 = vperm.xlu0 %460, %v306_v3   ;;  %v240_v11 = vld [vmem:[%s613_s1 + $0x40] sm:$0xff]  ;;  %v233_v17 = vld [vmem:[%s613_s1 + $0x8] sm:$0xff]  ;;  %v234_v21 = vld [vmem:[%s613_s1 + $0x10] sm:$0xff]  ;;  %s231_s14 = scalar_lea.vmem %s616_s4, %s407_s11 }
   0xf   : > { %v255_v0 = vld [vmem:[%s535_s22 + $0x38] sm:$0xff]  ;;  %v254_v1 = vld [vmem:[%s535_s22 + $0x30] sm:$0xff]  ;;  %v253_v2 = vld [vmem:[%s535_s22 + $0x28] sm:$0xff] }
  0x10   : > { %412 = vmatpush.xpose.msra.mxu2 %v255_v0  ;;  %413 = vmatpush.xpose.msra.mxu3 %v255_v0  ;;  %v252_v4 = vld [vmem:[%s535_s22 + $0x20] sm:$0xff]  ;;  %v251_v6 = vld [vmem:[%s535_s22 + $0x18] sm:$0xff]  ;;  %v250_v8 = vld [vmem:[%s535_s22 + $0x10] sm:$0xff] }
  0x11   : > { %264 = vmatpush.xpose.msra.mxu0 %v255_v0  ;;  %411 = vmatpush.xpose.msra.mxu1 %v255_v0  ;;  %v249_v9 = vld [vmem:[%s535_s22 + $0x8] sm:$0xff]  ;;  %v248_v10 = vld [vmem:[%s535_s22] sm:$0xff]  ;;  %v238_v22 = vld [vmem:[%s613_s1 + $0x30] sm:$0xff] }
  0x12   : > { %v244_v12 = vld [vmem:[%s613_s1 + $0x60] sm:$0xff]  ;;  %v237_v18 = vld [vmem:[%s613_s1 + $0x28] sm:$0xff]  ;;  %v243_v23 = vld [vmem:[%s613_s1 + $0x58] sm:$0xff] }
  0x13   : > { %v232_v13 = vld [vmem:[%s613_s1] sm:$0xff]  ;;  %v247_v24 = vld [vmem:[%s613_s1 + $0x78] sm:$0xff] }
  0x14   : > { %415 = vmatpush.xpose.msra.mxu2 %v254_v1  ;;  %416 = vmatpush.xpose.msra.mxu3 %v254_v1  ;;  %v236_v14 = vld [vmem:[%s613_s1 + $0x20] sm:$0xff]  ;;  %v235_v25 = vld [vmem:[%s613_s1 + $0x18] sm:$0xff] }
  0x15   : > { %265 = vmatpush.xpose.msra.mxu0 %v254_v1  ;;  %414 = vmatpush.xpose.msra.mxu1 %v254_v1  ;;  %v239_v26 = vld [vmem:[%s613_s1 + $0x38] sm:$0xff] }
  0x16   : > { %316 = vperm.xlu0 %460, %v313_v7  }
  0x18   : > { %418 = vmatpush.xpose.msra.mxu2 %v253_v2  ;;  %419 = vmatpush.xpose.msra.mxu3 %v253_v2 }
  0x19   : > { %266 = vmatpush.xpose.msra.mxu0 %v253_v2  ;;  %417 = vmatpush.xpose.msra.mxu1 %v253_v2 }
  0x1c   : > { %421 = vmatpush.xpose.msra.mxu2 %v252_v4  ;;  %422 = vmatpush.xpose.msra.mxu3 %v252_v4 }
  0x1d   : > { %267 = vmatpush.xpose.msra.mxu0 %v252_v4  ;;  %420 = vmatpush.xpose.msra.mxu1 %v252_v4 }
  0x20   : > { %424 = vmatpush.xpose.msra.mxu2 %v251_v6  ;;  %425 = vmatpush.xpose.msra.mxu3 %v251_v6 }
  0x21   : > { %268 = vmatpush.xpose.msra.mxu0 %v251_v6  ;;  %423 = vmatpush.xpose.msra.mxu1 %v251_v6 }
  0x24   : > { %427 = vmatpush.xpose.msra.mxu2 %v250_v8  ;;  %428 = vmatpush.xpose.msra.mxu3 %v250_v8 }
  0x25   : > { %269 = vmatpush.xpose.msra.mxu0 %v250_v8  ;;  %426 = vmatpush.xpose.msra.mxu1 %v250_v8 }
  0x28   : > { %430 = vmatpush.xpose.msra.mxu2 %v249_v9  ;;  %431 = vmatpush.xpose.msra.mxu3 %v249_v9 }
  0x29   : > { %270 = vmatpush.xpose.msra.mxu0 %v249_v9  ;;  %429 = vmatpush.xpose.msra.mxu1 %v249_v9 }
  0x2c   : > { %433 = vmatpush.xpose.msra.mxu2 %v248_v10  ;;  %434 = vmatpush.xpose.msra.mxu3 %v248_v10 }
  0x2d   : > { %271 = vmatpush.xpose.msra.mxu0 %v248_v10  ;;  %432 = vmatpush.xpose.msra.mxu1 %v248_v10 }
  0x2f   : > { %289 = vmatmul.f32.vlgmr.msra.gmra.mxu2 %v240_v11  ;;  %297 = vmatmul.f32.vlgmr.msra.gmra.mxu3 %v244_v12 }
  0x30   : > { %272 = vmatmul.f32.vlgmr.msra.gmra.mxu0 %v232_v13  ;;  %281 = vmatmul.f32.vlgmr.msra.gmra.mxu1 %v236_v14 }
  0x37   : > { %291 = vmatmul.f32.gmra.mxu2 %v241_v15  ;;  %299 = vmatmul.f32.gmra.mxu3 %v245_v16 }
  0x38   : > { %275 = vmatmul.f32.gmra.mxu0 %v233_v17  ;;  %283 = vmatmul.f32.gmra.mxu1 %v237_v18 }
  0x3f   : > { %293 = vmatmul.f32.gmra.mxu2 %v242_v19  ;;  %301 = vmatmul.f32.gmra.mxu3 %v246_v20 }
  0x40   : > { %277 = vmatmul.f32.gmra.mxu0 %v234_v21  ;;  %285 = vmatmul.f32.gmra.mxu1 %v238_v22 }
  0x47   : > { %295 = vmatmul.f32.gmra.mxu2 %v243_v23  ;;  %303 = vmatmul.f32.gmra.mxu3 %v247_v24 }
  0x48   : > { %279 = vmatmul.f32.gmra.mxu0 %v235_v25  ;;  %287 = vmatmul.f32.gmra.mxu1 %v239_v26 }
  0x80   : > { %v310_v27 = vpop.permute.xlu0 %309 }
  0x88   : > { %v317_v28 = vpop.permute.xlu0 %316 }
  0xad   : > { %v273_v29 = vpop.f32.mrf.mxu0  ;;  %v282_v30 = vpop.f32.mrf.mxu1 }
  0xae   : > { %v312_v31 = vmul.f32 %v310_v27, %v273_v29 }
  0xb0   : > { %v319_v32 = vadd.f32 %v317_v28, %v312_v31 }
  0xb2   : > { %v290_v33 = vpop.f32.mrf.mxu2  ;;  %v298_v34 = vpop.f32.mrf.mxu3  ;;  %v320_v35 = vmax.f32 %v319_v32, 0.0 }
  0xb4   : > { %322 = vst.msk [vmem:[%s231_s14] sm:$0xff] %vm321_vm0, %v320_v35 }
  0xb5   : > { %v276_v36 = vpop.f32.mrf.mxu0  ;;  %v284_v37 = vpop.f32.mrf.mxu1 }
  0xba   : > { %v292_v38 = vpop.f32.mrf.mxu2  ;;  %v300_v39 = vpop.f32.mrf.mxu3 }
  0xbd   : > { %v278_v40 = vpop.f32.mrf.mxu0  ;;  %v286_v41 = vpop.f32.mrf.mxu1 }
  0xc2   : > { %v294_v42 = vpop.f32.mrf.mxu2  ;;  %v302_v43 = vpop.f32.mrf.mxu3 }
  0xc5   : > { %v280_v44 = vpop.f32.mrf.mxu0  ;;  %v288_v45 = vpop.f32.mrf.mxu1 }
  0xca   : > { %v296_v46 = vpop.f32.mrf.mxu2  ;;  %v304_v47 = vpop.f32.mrf.mxu3 }
  0xcb PF: > { %s14_s17 = sadd.s32 1, %s483_s17   ;;  %s617_s15 = smov %s479_s16 }
  0xcc   : > { %p11_p5 = scmp.ge.s32.totalorder %s14_s17, 4   ;;  %s618_s16 = smov %s620_s18 }
  0xce   :  { %13 = sbr.rel (!%p11_p5) target bundleno = 2 (0x2), region = 66 }

// kernel: conv_bn_relu_forward.2
= control target key start
LH: loop header
LB: loop body
LE: loop exit
PB: predicated region body
PF: predicated region fallthrough
CT: control target
= control target key end

     0   :  { %s478_s9 = smov 0   ;;  %s480_s10 = smov 0   ;;  %s567_s0 = inlined_call_operand.vmem [shape: f32[2,64,128], index: 0, kind: input, shape index: {}]   ;;  %s568_s1 = inlined_call_operand.vmem [shape: f32[128,128], index: 1, kind: input, shape index: {}]   ;;  %s569_s2 = inlined_call_operand.vmem [shape: f32[2,1,2,128], index: 2, kind: output, shape index: {}]  }
   0x1   :  { %s482_s11 = smov 0  }
   0x2 LB: > { %s24_s12 = sadd.s32 1, %s457_s10  ;;  %p360_p0 = scmp.ge.s32.totalorder %s461_s11, 1  ;;  %s461_s11 = sphi %s482_s11, %s12_s11   ;;  %s457_s10 = sphi %s480_s10, %s571_s10   ;;  %s453_s9 = sphi %s478_s9, %s570_s9  }
   0x3   : > { %p26_p1 = scmp.ge.s32.totalorder %s24_s12, 2  ;;  %p133_p2 = scmp.lt.s32.totalorder %s461_s11, 3 }
   0x5   : > { %s573_s12 = smov (%p26_p1, %s24_s12), 0  ;;  %p134_p3 = pnand %p360_p0, %p133_p2 }
   0x6   : > { %p162_p4 = scmp.lt.s32.totalorder (!%p134_p3), %s453_s9, 1 }
   0x7   : > { %137 = sbr.rel (%p134_p3) target bundleno = 207 (0xcf), region = 28 }
   0xc   : > { %v201_v0 = vld [vmem:[%s568_s1 + $0x78] sm:$0xff]  ;;  %v200_v1 = vld [vmem:[%s568_s1 + $0x70] sm:$0xff]  ;;  %v199_v2 = vld [vmem:[%s568_s1 + $0x68] sm:$0xff]  ;;  %s575_s9 = smov (!%p162_p4, %s453_s9), 1 }
   0xd   : > { %202 = vmatpush.msra.mxu0 %v201_v0  ;;  %368 = vmatpush.msra.mxu2 %v201_v0  ;;  %v198_v3 = vld [vmem:[%s568_s1 + $0x60] sm:$0xff]  ;;  %v197_v4 = vld [vmem:[%s568_s1 + $0x58] sm:$0xff]  ;;  %v196_v5 = vld [vmem:[%s568_s1 + $0x50] sm:$0xff]  ;;  %s366_s15 = sshll.u32 %s575_s9, 6  ;;  %s363_s25 = sshll.u32 %s575_s9, 1 }
   0xe   : > { %367 = vmatpush.msra.mxu1 %v201_v0  ;;  %369 = vmatpush.msra.mxu3 %v201_v0  ;;  %v195_v6 = vld [vmem:[%s568_s1 + $0x48] sm:$0xff]  ;;  %v194_v7 = vld [vmem:[%s568_s1 + $0x40] sm:$0xff]  ;;  %v193_v8 = vld [vmem:[%s568_s1 + $0x38] sm:$0xff]  ;;  %s169_s22 = scalar_lea.vmem %s567_s0, %s366_s15  ;;  %s177_s28 = scalar_lea.vmem %s569_s2, %s363_s25 }
   0xf   : > { %203 = vmatpush.msra.mxu0 %v200_v1  ;;  %371 = vmatpush.msra.mxu2 %v200_v1  ;;  %v192_v9 = vld [vmem:[%s568_s1 + $0x30] sm:$0xff]  ;;  %v191_v10 = vld [vmem:[%s568_s1 + $0x28] sm:$0xff]  ;;  %v190_v11 = vld [vmem:[%s568_s1 + $0x20] sm:$0xff] }
  0x10   : > { %370 = vmatpush.msra.mxu1 %v200_v1  ;;  %372 = vmatpush.msra.mxu3 %v200_v1  ;;  %v189_v12 = vld [vmem:[%s568_s1 + $0x18] sm:$0xff]  ;;  %v188_v13 = vld [vmem:[%s568_s1 + $0x10] sm:$0xff]  ;;  %v187_v14 = vld [vmem:[%s568_s1 + $0x8] sm:$0xff] }
  0x11   : > { %204 = vmatpush.msra.mxu0 %v199_v2  ;;  %374 = vmatpush.msra.mxu2 %v199_v2  ;;  %v186_v15 = vld [vmem:[%s568_s1] sm:$0xff]  ;;  %v180_v18 = vld [vmem:[%s169_s22 + $0x10] sm:$0xff]  ;;  %v179_v20 = vld [vmem:[%s169_s22 + $0x8] sm:$0xff] }
  0x12   : > { %373 = vmatpush.msra.mxu1 %v199_v2  ;;  %375 = vmatpush.msra.mxu3 %v199_v2  ;;  %v178_v16 = vld [vmem:[%s169_s22] sm:$0xff]  ;;  %v184_v19 = vld [vmem:[%s169_s22 + $0x30] sm:$0xff]  ;;  %v183_v21 = vld [vmem:[%s169_s22 + $0x28] sm:$0xff] }
  0x13   : > { %205 = vmatpush.msra.mxu0 %v198_v3  ;;  %377 = vmatpush.msra.mxu2 %v198_v3  ;;  %v182_v17 = vld [vmem:[%s169_s22 + $0x20] sm:$0xff]  ;;  %v181_v22 = vld [vmem:[%s169_s22 + $0x18] sm:$0xff] }
  0x14   : > { %376 = vmatpush.msra.mxu1 %v198_v3  ;;  %378 = vmatpush.msra.mxu3 %v198_v3  ;;  %v185_v23 = vld [vmem:[%s169_s22 + $0x38] sm:$0xff] }
  0x15   : > { %206 = vmatpush.msra.mxu0 %v197_v4  ;;  %380 = vmatpush.msra.mxu2 %v197_v4 }
  0x16   : > { %379 = vmatpush.msra.mxu1 %v197_v4  ;;  %381 = vmatpush.msra.mxu3 %v197_v4 }
  0x17   : > { %207 = vmatpush.msra.mxu0 %v196_v5  ;;  %383 = vmatpush.msra.mxu2 %v196_v5 }
  0x18   : > { %382 = vmatpush.msra.mxu1 %v196_v5  ;;  %384 = vmatpush.msra.mxu3 %v196_v5 }
  0x19   : > { %208 = vmatpush.msra.mxu0 %v195_v6  ;;  %386 = vmatpush.msra.mxu2 %v195_v6 }
  0x1a   : > { %385 = vmatpush.msra.mxu1 %v195_v6  ;;  %387 = vmatpush.msra.mxu3 %v195_v6 }
  0x1b   : > { %209 = vmatpush.msra.mxu0 %v194_v7  ;;  %389 = vmatpush.msra.mxu2 %v194_v7 }
  0x1c   : > { %388 = vmatpush.msra.mxu1 %v194_v7  ;;  %390 = vmatpush.msra.mxu3 %v194_v7 }
  0x1d   : > { %210 = vmatpush.msra.mxu0 %v193_v8  ;;  %392 = vmatpush.msra.mxu2 %v193_v8 }
  0x1e   : > { %391 = vmatpush.msra.mxu1 %v193_v8  ;;  %393 = vmatpush.msra.mxu3 %v193_v8 }
  0x1f   : > { %211 = vmatpush.msra.mxu0 %v192_v9  ;;  %395 = vmatpush.msra.mxu2 %v192_v9 }
  0x20   : > { %394 = vmatpush.msra.mxu1 %v192_v9  ;;  %396 = vmatpush.msra.mxu3 %v192_v9 }
  0x21   : > { %212 = vmatpush.msra.mxu0 %v191_v10  ;;  %398 = vmatpush.msra.mxu2 %v191_v10 }
  0x22   : > { %397 = vmatpush.msra.mxu1 %v191_v10  ;;  %399 = vmatpush.msra.mxu3 %v191_v10 }
  0x23   : > { %213 = vmatpush.msra.mxu0 %v190_v11  ;;  %401 = vmatpush.msra.mxu2 %v190_v11 }
  0x24   : > { %400 = vmatpush.msra.mxu1 %v190_v11  ;;  %402 = vmatpush.msra.mxu3 %v190_v11 }
  0x25   : > { %214 = vmatpush.msra.mxu0 %v189_v12  ;;  %404 = vmatpush.msra.mxu2 %v189_v12 }
  0x26   : > { %403 = vmatpush.msra.mxu1 %v189_v12  ;;  %405 = vmatpush.msra.mxu3 %v189_v12 }
  0x27   : > { %215 = vmatpush.msra.mxu0 %v188_v13  ;;  %407 = vmatpush.msra.mxu2 %v188_v13 }
  0x28   : > { %406 = vmatpush.msra.mxu1 %v188_v13  ;;  %408 = vmatpush.msra.mxu3 %v188_v13 }
  0x29   : > { %216 = vmatpush.msra.mxu0 %v187_v14  ;;  %410 = vmatpush.msra.mxu2 %v187_v14 }
  0x2a   : > { %409 = vmatpush.msra.mxu1 %v187_v14  ;;  %411 = vmatpush.msra.mxu3 %v187_v14 }
  0x2b   : > { %217 = vmatpush.msra.mxu0 %v186_v15  ;;  %413 = vmatpush.msra.mxu2 %v186_v15 }
  0x2c   : > { %218 = vmatmul.f32.vlgmr.msra.gmra.mxu0 %v178_v16  ;;  %230 = vmatmul.f32.vlgmr.msra.gmra.mxu2 %v182_v17 }
  0x2d   : > { %412 = vmatpush.msra.mxu1 %v186_v15  ;;  %414 = vmatpush.msra.mxu3 %v186_v15 }
  0x2e   : > { %224 = vmatmul.f32.vlgmr.msra.gmra.mxu1 %v180_v18  ;;  %236 = vmatmul.f32.vlgmr.msra.gmra.mxu3 %v184_v19 }
  0x34   : > { %221 = vmatmul.f32.gmra.mxu0 %v179_v20  ;;  %233 = vmatmul.f32.gmra.mxu2 %v183_v21 }
  0x36   : > { %227 = vmatmul.f32.gmra.mxu1 %v181_v22  ;;  %239 = vmatmul.f32.gmra.mxu3 %v185_v23 }
  0xa9   : > { %v219_v24 = vpop.f32.mrf.mxu0 }
  0xaa   : > { %v257_v29 = vmul.f32 %v219_v24, %v219_v24 }
  0xab   : > { %v225_v25 = vpop.f32.mrf.mxu1 }
  0xac   : > { %v259_v33 = vmul.f32 %v225_v25, %v225_v25 }
  0xaf   : > { %v231_v26 = vpop.f32.mrf.mxu2 }
  0xb0   : > { %v261_v40 = vmul.f32 %v231_v26, %v231_v26 }
  0xb1   : > { %v222_v27 = vpop.f32.mrf.mxu0  ;;  %v237_v28 = vpop.f32.mrf.mxu3 }
  0xb2   : > { %v243_v30 = vadd.f32 %v222_v27, %v219_v24  ;;  %v258_v31 = vmul.f32 %v222_v27, %v222_v27  ;;  %v263_v47 = vmul.f32 %v237_v28, %v237_v28 }
  0xb3   : > { %v228_v32 = vpop.f32.mrf.mxu1 }
  0xb4   : > { %v265_v34 = vadd.f32 %v258_v31, %v257_v29  ;;  %v244_v35 = vadd.f32 %v243_v30, %v225_v25  ;;  %v260_v36 = vmul.f32 %v228_v32, %v228_v32 }
  0xb6   : > { %v245_v37 = vadd.f32 %v244_v35, %v228_v32  ;;  %v266_v38 = vadd.f32 %v265_v34, %v259_v33 }
  0xb7   : > { %v234_v39 = vpop.f32.mrf.mxu2 }
  0xb8   : > { %v267_v41 = vadd.f32 %v266_v38, %v260_v36  ;;  %v246_v42 = vadd.f32 %v245_v37, %v231_v26  ;;  %v262_v43 = vmul.f32 %v234_v39, %v234_v39 }
  0xb9   : > { %v240_v44 = vpop.f32.mrf.mxu3 }
  0xba   : > { %v247_v45 = vadd.f32 %v246_v42, %v234_v39  ;;  %v268_v46 = vadd.f32 %v267_v41, %v261_v40  ;;  %v264_v50 = vmul.f32 %v240_v44, %v240_v44 }
  0xbc   : > { %v269_v48 = vadd.f32 %v268_v46, %v262_v43  ;;  %v248_v49 = vadd.f32 %v247_v45, %v237_v28 }
  0xbe   : > { %v249_v51 = vadd.f32 %v248_v49, %v240_v44  ;;  %v270_v52 = vadd.f32 %v269_v48, %v263_v47 }
  0xc0   : > { %v250_v53 = vrot.slane %v249_v51, 4  ;;  %v271_v54 = vadd.f32 %v270_v52, %v264_v50 }
  0xc2   : > { %v251_v55 = vadd.f32 %v250_v53, %v249_v51  ;;  %v272_v56 = vrot.slane %v271_v54, 4 }
  0xc4   : > { %v252_v57 = vrot.slane %v251_v55, 2  ;;  %v273_v58 = vadd.f32 %v272_v56, %v271_v54 }
  0xc6   : > { %v253_v59 = vadd.f32 %v252_v57, %v251_v55  ;;  %v274_v60 = vrot.slane %v273_v58, 2 }
  0xc8   : > { %v254_v61 = vrot.slane %v253_v59, 1  ;;  %v275_v62 = vadd.f32 %v274_v60, %v273_v58 }
  0xca   : > { %v255_v63 = vadd.f32 %v254_v61, %v253_v59  ;;  %v276_v0 = vrot.slane %v275_v62, 1 }
  0xcc   : > { %256 = vst [vmem:[%s177_s28] sm:$0x1] %v255_v63  ;;  %v277_v1 = vadd.f32 %v276_v0, %v275_v62 }
  0xce   : > { %278 = vst [vmem:[%s177_s28 + $0x1] sm:$0x1] %v277_v1 }
  0xcf PF: > { %s12_s11 = sadd.s32 1, %s461_s11   ;;  %s570_s9 = smov %s457_s10 }
  0xd0   : > { %p9_p5 = scmp.ge.s32.totalorder %s12_s11, 4   ;;  %s571_s10 = smov %s573_s12 }
  0xd2   :  { %11 = sbr.rel (!%p9_p5) target bundleno = 2 (0x2), region = 58 }

</bundles_post_ra>
